<compile_context>
chip_gen: v7x
topology: tpu7x:2x2x1
jax: 0.10.0
libtpu: 0.0.40
codegen_flags: <defaults>
</compile_context>

<pallas_src>
import jax
import jax.numpy as jnp
from jax.experimental import pallas as pl
from jax.experimental.pallas import tpu as pltpu


def _hbm_copy_kernel(x_hbm, o_hbm, sem):
    # Single HBM->HBM DMA of the full array: no VMEM staging, no vreg traffic.
    cp = pltpu.make_async_copy(x_hbm, o_hbm, sem)
    cp.start()
    cp.wait()


def identity_copy(x):
    """Materialize a fresh buffer holding a bit-exact copy of `x` via one DMA."""
    return pl.pallas_call(
        _hbm_copy_kernel,
        out_shape=jax.ShapeDtypeStruct(x.shape, x.dtype),
        in_specs=[pl.BlockSpec(memory_space=pl.ANY)],
        out_specs=pl.BlockSpec(memory_space=pl.ANY),
        scratch_shapes=[pltpu.SemaphoreType.DMA(())],
    )(x)


@jax.jit
def model_forward(v1):
    """Reproduces Model.forward for a 3-channel NCHW input."""
    # torch.split(v1, [1,1,1], dim=1) -> three channel views (plain slices).
    split_tensors = (v1[:, 0:1, :, :], v1[:, 1:2, :, :], v1[:, 2:3, :, :])
    # torch.cat(split_tensors, dim=1) == v1, but allocates a new tensor.
    # One whole-array HBM->HBM DMA reproduces that allocation+copy.
    concatenated = identity_copy(v1)
    return concatenated, split_tensors


if __name__ == "__main__":
    key = jax.random.PRNGKey(0)
    # Input must have exactly 3 channels for split([1, 1, 1], dim=1).
    v1 = jax.random.normal(key, (2, 3, 16, 16), dtype=jnp.float32)

    concatenated, splits = model_forward(v1)
    jax.block_until_ready(concatenated)
    for s in splits:
        jax.block_until_ready(s)

    # Sanity checks: cat(split(v1)) == v1, splits match channel slices.
    assert concatenated.shape == (2, 3, 16, 16)
    assert jnp.array_equal(concatenated, v1)
    assert all(s.shape == (2, 1, 16, 16) for s in splits)
    assert jnp.array_equal(splits[0][:, 0], v1[:, 0])
    assert jnp.array_equal(splits[1][:, 0], v1[:, 1])
    assert jnp.array_equal(splits[2][:, 0], v1[:, 2])

    print("KERNEL_OK")
</pallas_src>

<mosaic_0001>
module attributes {stable_mosaic.version = 11 : i64} {
  func.func @_hbm_copy_kernel(%arg0: memref<2x3x16x16xf32, #tpu.memory_space<any>>, %arg1: memref<2x3x16x16xf32, #tpu.memory_space<any>>, %arg2: memref<!tpu.dma_semaphore, #tpu.memory_space<semaphore_mem>>) attributes {dimension_semantics = [], scalar_prefetch = 0 : i64, scratch_operands = 1 : i64, tpu.core_type = #tpu.core_type<tc>} {
    tpu.enqueue_dma source(%arg0 : memref<2x3x16x16xf32, #tpu.memory_space<any>>) target(%arg1 : memref<2x3x16x16xf32, #tpu.memory_space<any>>) target_semaphore(%arg2 : memref<!tpu.dma_semaphore, #tpu.memory_space<semaphore_mem>>)
    tpu.wait_dma2 semaphore(%arg2 : memref<!tpu.dma_semaphore, #tpu.memory_space<semaphore_mem>>) src(%arg0 : memref<2x3x16x16xf32, #tpu.memory_space<any>>) dst(%arg1 : memref<2x3x16x16xf32, #tpu.memory_space<any>>)
    return
  }
}

</mosaic_0001>

<bundles_post_ra>
// kernel: model_forward.1
= control target key start
LH: loop header
LB: loop body
LE: loop exit
PB: predicated region body
PF: predicated region fallthrough
CT: control target
= control target key end

     0   :  { %s36_s6 = smov [#allocation2]   ;;  %s37_s7 = smov [#allocation3]   ;;  %s55_s0 = inlined_call_operand.hbm [shape: f32[2,3,16,16], index: 0, kind: input, shape index: {}]   ;;  %s56_s1 = inlined_call_operand.hbm [shape: f32[2,3,16,16], index: 1, kind: output, shape index: {}]  }
   0x1   :  { %s38_s8 = smov 0  }
   0x2   :  { %18 = dma.general %s55_s0, 1536, %s56_s1, %s36_s6, %s37_s7, [#allocation4], %s38_s8, 0  }
   0x3   :  { %34 = dma.done.wait [#allocation2], 1536 }
   0x4   :  { %35 = vsyncadd [#allocation2], 4294965760 }
   0x5   :  { %24 = vsyncmov [#allocation2] }
   0x8   :  { %s25_s13 = vpop.sfrf %24 }
   0x9   :  { %p30_p0 = scmp.ne.s32.totalorder %s25_s13, 0 }
   0xb   :  { %29 = shalt.err (%p30_p0)  }

</bundles_post_ra>
